<compile_context>
chip_gen: v5e
topology: v5e:2x2
jax: 0.10.0
libtpu: 0.0.40
codegen_flags: <defaults>
</compile_context>

<pallas_src>
import jax
import jax.numpy as jnp
from jax.experimental import pallas as pl
from jax.experimental.pallas import tpu as pltpu

STATE_DIM = 4      # CartPole-v1 observation_space.shape[0]
ACTION_DIM = 2     # CartPole-v1 action_space.n
HIDDEN_DIM = 128


def _round_up(n, m):
    return ((n + m - 1) // m) * m


def _policy_kernel(x_ref, w1_ref, b1_ref, w2_ref, b2_ref, w3d_ref, b3d_ref, o_ref):
    x = x_ref[...]                         # (TB, 4)   f32
    w1 = w1_ref[...]                       # (4, 128)  f32

    # fc1 + ReLU: K=4 contraction as VPU broadcast-FMAs (no MXU pass needed).
    h1 = b1_ref[...] + x[:, 0:1] * w1[0:1, :]
    for k in range(1, STATE_DIM):          # static unroll
        h1 = h1 + x[:, k:k + 1] * w1[k:k + 1, :]
    h1 = jnp.maximum(h1, 0.0)

    # fc2 + ReLU: the only MXU work (TB x 128 @ 128 x 128), bf16 operands with
    # f32 accumulation; bias/ReLU stay f32.
    h2 = jnp.dot(h1.astype(jnp.bfloat16), w2_ref[...],
                 preferred_element_type=jnp.float32) + b2_ref[...]
    h2 = jnp.maximum(h2, 0.0)

    # fc3 + 2-class softmax, collapsed to the logit difference d = l0 - l1.
    # VPU multiply + XLU lane-reduce instead of an N=1 MXU matmul.
    d = jnp.sum(h2 * w3d_ref[...], axis=-1, keepdims=True) + b3d_ref[...]   # (TB, 1)

    # softmax over 2 actions == [sigmoid(d), 1 - sigmoid(d)]; one exp (EUP),
    # approx reciprocal (EUP vrcp), exact normalization.
    p0 = pl.reciprocal(1.0 + jnp.exp(-d), approx=True)                      # (TB, 1)
    lane = jax.lax.broadcasted_iota(jnp.int32, (1, ACTION_DIM), 1)
    o_ref[...] = jnp.where(lane == 0, p0, 1.0 - p0)                         # (TB, 2)


def _choose_tile(batch, tile_b):
    """Pick a batch tile: multiple of 8, capped at tile_b, and small enough
    that the grid has >= 2 steps whenever batch > 8 (so the 'parallel' batch
    axis can shard across the two TensorCores on v7x)."""
    tb = min(tile_b, _round_up((batch + 1) // 2, 8))
    return max(8, tb)


def policy_net_forward(x, params, *, tile_b=1024):
    """x: (B, STATE_DIM) float32 -> (B, ACTION_DIM) float32 action probabilities."""
    w1, b1, w2, b2, w3, b3 = params
    B = x.shape[0]

    # Fold the 2-class softmax into a sigmoid of the logit difference; keep
    # w3d as a (1, HIDDEN_DIM) row so the kernel can use a lane-reduce.
    w3d = (w3[:, 0] - w3[:, 1]).reshape(1, HIDDEN_DIM)   # (1, HIDDEN_DIM) f32
    b3d = b3[:, 0:1] - b3[:, 1:2]                        # (1, 1) f32

    # Cast the fc2 weight once; the kernel casts h1 at the dot boundary.
    w2_bf16 = w2.astype(jnp.bfloat16)

    # Batch tiling: tiles are multiples of 8 sublanes; pad the batch to a
    # multiple of the tile and slice the result back. Padded (zero) rows flow
    # through to finite garbage probabilities and are dropped afterwards.
    tb = _choose_tile(B, tile_b)
    b_pad = _round_up(B, tb)
    if b_pad != B:
        x = jnp.pad(x, ((0, b_pad - B), (0, 0)))

    const = lambda i: (0, 0)               # weights stay VMEM-resident across the grid
    out = pl.pallas_call(
        _policy_kernel,
        out_shape=jax.ShapeDtypeStruct((b_pad, ACTION_DIM), jnp.float32),
        grid=(b_pad // tb,),
        in_specs=[
            pl.BlockSpec((tb, STATE_DIM), lambda i: (i, 0)),        # x tile (pipelined)
            pl.BlockSpec((STATE_DIM, HIDDEN_DIM), const),           # w1
            pl.BlockSpec((1, HIDDEN_DIM), const),                   # b1
            pl.BlockSpec((HIDDEN_DIM, HIDDEN_DIM), const),          # w2 (bf16)
            pl.BlockSpec((1, HIDDEN_DIM), const),                   # b2
            pl.BlockSpec((1, HIDDEN_DIM), const),                   # w3d
            pl.BlockSpec((1, 1), const),                            # b3d
        ],
        out_specs=pl.BlockSpec((tb, ACTION_DIM), lambda i: (i, 0)),
        compiler_params=pltpu.CompilerParams(
            dimension_semantics=("parallel",),
        ),
    )(x, w1, b1, w2_bf16, b2, w3d, b3d)
    return out[:B]


def init_params(key):
    """PyTorch-style uniform(+-1/sqrt(fan_in)) init; weights stored (in, out)."""
    k1, k2, k3, k4, k5, k6 = jax.random.split(key, 6)

    def uni(k, shape, fan_in):
        bound = 1.0 / jnp.sqrt(jnp.float32(fan_in))
        return jax.random.uniform(k, shape, jnp.float32, -bound, bound)

    w1 = uni(k1, (STATE_DIM, HIDDEN_DIM), STATE_DIM)
    b1 = uni(k2, (1, HIDDEN_DIM), STATE_DIM)
    w2 = uni(k3, (HIDDEN_DIM, HIDDEN_DIM), HIDDEN_DIM)
    b2 = uni(k4, (1, HIDDEN_DIM), HIDDEN_DIM)
    w3 = uni(k5, (HIDDEN_DIM, ACTION_DIM), HIDDEN_DIM)
    b3 = uni(k6, (1, ACTION_DIM), HIDDEN_DIM)
    return (w1, b1, w2, b2, w3, b3)


def _reference_forward(x, params):
    w1, b1, w2, b2, w3, b3 = params
    hp = jax.lax.Precision.HIGHEST
    h1 = jnp.maximum(jnp.dot(x, w1, precision=hp) + b1, 0.0)
    h2 = jnp.maximum(jnp.dot(h1, w2, precision=hp) + b2, 0.0)
    logits = jnp.dot(h2, w3, precision=hp) + b3
    return jax.nn.softmax(logits, axis=1)


if __name__ == "__main__":
    key = jax.random.PRNGKey(0)
    k_params, k_x1, k_x2 = jax.random.split(key, 3)
    params = init_params(k_params)

    # Tolerance vs the f32 reference is relaxed because fc2 runs with bf16
    # operands (and the sigmoid uses an approximate EUP reciprocal).
    TOL = 2e-2

    # Small batch (not a multiple of 8) -> exercises pad + single-tile path.
    batch = 6
    x = jax.random.normal(k_x1, (batch, STATE_DIM), dtype=jnp.float32)
    probs = jax.block_until_ready(policy_net_forward(x, params))
    ref = _reference_forward(x, params)
    assert probs.shape == (batch, ACTION_DIM)
    assert jnp.allclose(probs, ref, atol=TOL, rtol=0.0)
    assert jnp.allclose(jnp.sum(probs, axis=1), 1.0, atol=1e-6)

    # Larger batch -> exercises the multi-tile grid (>= 2 steps) + padding path.
    big = 1040
    xb = jax.random.normal(k_x2, (big, STATE_DIM), dtype=jnp.float32)
    probs_b = jax.block_until_ready(policy_net_forward(xb, params))
    ref_b = _reference_forward(xb, params)
    assert probs_b.shape == (big, ACTION_DIM)
    assert jnp.allclose(probs_b, ref_b, atol=TOL, rtol=0.0)
    assert jnp.allclose(jnp.sum(probs_b, axis=1), 1.0, atol=1e-6)

    print("KERNEL_OK")
</pallas_src>

<mosaic_0001>
module attributes {stable_mosaic.version = 11 : i64} {
  func.func @_policy_kernel(%arg0: i32, %arg1: memref<8x4xf32, #tpu.memory_space<vmem>>, %arg2: memref<4x128xf32, #tpu.memory_space<vmem>>, %arg3: memref<1x128xf32, #tpu.memory_space<vmem>>, %arg4: memref<128x128xbf16, #tpu.memory_space<vmem>>, %arg5: memref<1x128xf32, #tpu.memory_space<vmem>>, %arg6: memref<1x128xf32, #tpu.memory_space<vmem>>, %arg7: memref<1x1xf32, #tpu.memory_space<vmem>>, %arg8: memref<8x2xf32, #tpu.memory_space<vmem>>) attributes {dimension_semantics = [#tpu.dimension_semantics<parallel>], iteration_bounds = array<i64: 1>, scalar_prefetch = 0 : i64, scratch_operands = 0 : i64, tpu.core_type = #tpu.core_type<tc>, window_params = [{transform_indices = @transform_0, window_bounds = array<i64: 8, 4>}, {pipeline_mode = #tpu.pipeline_mode<synchronous>, transform_indices = @transform_1, window_bounds = array<i64: 4, 128>}, {pipeline_mode = #tpu.pipeline_mode<synchronous>, transform_indices = @transform_2, window_bounds = array<i64: 1, 128>}, {pipeline_mode = #tpu.pipeline_mode<synchronous>, transform_indices = @transform_3, window_bounds = array<i64: 128, 128>}, {pipeline_mode = #tpu.pipeline_mode<synchronous>, transform_indices = @transform_4, window_bounds = array<i64: 1, 128>}, {pipeline_mode = #tpu.pipeline_mode<synchronous>, transform_indices = @transform_5, window_bounds = array<i64: 1, 128>}, {pipeline_mode = #tpu.pipeline_mode<synchronous>, transform_indices = @transform_6, window_bounds = array<i64: 1, 1>}, {transform_indices = @transform_7, window_bounds = array<i64: 8, 2>}]} {
    %c0 = arith.constant 0 : index
    %c0_0 = arith.constant 0 : index
    %0 = vector.load %arg1[%c0, %c0_0] : memref<8x4xf32, #tpu.memory_space<vmem>>, vector<8x4xf32>
    %c0_1 = arith.constant 0 : index
    %c0_2 = arith.constant 0 : index
    %1 = vector.load %arg2[%c0_1, %c0_2] : memref<4x128xf32, #tpu.memory_space<vmem>>, vector<4x128xf32>
    %c0_3 = arith.constant 0 : index
    %c0_4 = arith.constant 0 : index
    %2 = vector.load %arg3[%c0_3, %c0_4] : memref<1x128xf32, #tpu.memory_space<vmem>>, vector<1x128xf32>
    %3 = vector.extract_strided_slice %0 {offsets = [0, 0], sizes = [8, 1], strides = [1, 1]} : vector<8x4xf32> to vector<8x1xf32>
    %4 = vector.extract_strided_slice %1 {offsets = [0, 0], sizes = [1, 128], strides = [1, 1]} : vector<4x128xf32> to vector<1x128xf32>
    %5 = vector.broadcast %3 : vector<8x1xf32> to vector<8x128xf32>
    %6 = vector.broadcast %4 : vector<1x128xf32> to vector<8x128xf32>
    %7 = arith.mulf %5, %6 : vector<8x128xf32>
    %8 = vector.broadcast %2 : vector<1x128xf32> to vector<8x128xf32>
    %9 = arith.addf %8, %7 : vector<8x128xf32>
    %10 = vector.extract_strided_slice %0 {offsets = [0, 1], sizes = [8, 1], strides = [1, 1]} : vector<8x4xf32> to vector<8x1xf32>
    %11 = vector.extract_strided_slice %1 {offsets = [1, 0], sizes = [1, 128], strides = [1, 1]} : vector<4x128xf32> to vector<1x128xf32>
    %12 = vector.broadcast %10 : vector<8x1xf32> to vector<8x128xf32>
    %13 = vector.broadcast %11 : vector<1x128xf32> to vector<8x128xf32>
    %14 = arith.mulf %12, %13 : vector<8x128xf32>
    %15 = arith.addf %9, %14 : vector<8x128xf32>
    %16 = vector.extract_strided_slice %0 {offsets = [0, 2], sizes = [8, 1], strides = [1, 1]} : vector<8x4xf32> to vector<8x1xf32>
    %17 = vector.extract_strided_slice %1 {offsets = [2, 0], sizes = [1, 128], strides = [1, 1]} : vector<4x128xf32> to vector<1x128xf32>
    %18 = vector.broadcast %16 : vector<8x1xf32> to vector<8x128xf32>
    %19 = vector.broadcast %17 : vector<1x128xf32> to vector<8x128xf32>
    %20 = arith.mulf %18, %19 : vector<8x128xf32>
    %21 = arith.addf %15, %20 : vector<8x128xf32>
    %22 = vector.extract_strided_slice %0 {offsets = [0, 3], sizes = [8, 1], strides = [1, 1]} : vector<8x4xf32> to vector<8x1xf32>
    %23 = vector.extract_strided_slice %1 {offsets = [3, 0], sizes = [1, 128], strides = [1, 1]} : vector<4x128xf32> to vector<1x128xf32>
    %24 = vector.broadcast %22 : vector<8x1xf32> to vector<8x128xf32>
    %25 = vector.broadcast %23 : vector<1x128xf32> to vector<8x128xf32>
    %26 = arith.mulf %24, %25 : vector<8x128xf32>
    %27 = arith.addf %21, %26 : vector<8x128xf32>
    %cst = arith.constant 0.000000e+00 : f32
    %28 = vector.broadcast %cst : f32 to vector<8x128xf32>
    %29 = arith.maximumf %27, %28 : vector<8x128xf32>
    %30 = arith.truncf %29 : vector<8x128xf32> to vector<8x128xbf16>
    %c0_5 = arith.constant 0 : index
    %c0_6 = arith.constant 0 : index
    %31 = vector.load %arg4[%c0_5, %c0_6] : memref<128x128xbf16, #tpu.memory_space<vmem>>, vector<128x128xbf16>
    %cst_7 = arith.constant dense<0.000000e+00> : vector<8x128xf32>
    %32 = tpu.matmul %30, %31, %cst_7 {dimension_numbers = #tpu.dot_dimension_numbers<[1], [0], [0], [1], [0, 0, 1, 1], [], []>} : vector<8x128xbf16>, vector<128x128xbf16>, vector<8x128xf32> -> vector<8x128xf32>
    %c0_8 = arith.constant 0 : index
    %c0_9 = arith.constant 0 : index
    %33 = vector.load %arg5[%c0_8, %c0_9] : memref<1x128xf32, #tpu.memory_space<vmem>>, vector<1x128xf32>
    %34 = vector.broadcast %33 : vector<1x128xf32> to vector<8x128xf32>
    %35 = arith.addf %32, %34 : vector<8x128xf32>
    %cst_10 = arith.constant 0.000000e+00 : f32
    %36 = vector.broadcast %cst_10 : f32 to vector<8x128xf32>
    %37 = arith.maximumf %35, %36 : vector<8x128xf32>
    %c0_11 = arith.constant 0 : index
    %c0_12 = arith.constant 0 : index
    %38 = vector.load %arg6[%c0_11, %c0_12] : memref<1x128xf32, #tpu.memory_space<vmem>>, vector<1x128xf32>
    %39 = vector.broadcast %38 : vector<1x128xf32> to vector<8x128xf32>
    %40 = arith.mulf %37, %39 : vector<8x128xf32>
    %cst_13 = arith.constant dense<0.000000e+00> : vector<8xf32>
    %41 = vector.multi_reduction <add>, %40, %cst_13 [1] : vector<8x128xf32> to vector<8xf32>
    %42 = vector.shape_cast %41 : vector<8xf32> to vector<8x1xf32>
    %c0_14 = arith.constant 0 : index
    %c0_15 = arith.constant 0 : index
    %43 = vector.load %arg7[%c0_14, %c0_15] : memref<1x1xf32, #tpu.memory_space<vmem>>, vector<1x1xf32>
    %44 = vector.broadcast %43 : vector<1x1xf32> to vector<8x1xf32>
    %45 = arith.addf %42, %44 : vector<8x1xf32>
    %cst_16 = arith.constant 0.000000e+00 : f32
    %46 = vector.broadcast %cst_16 : f32 to vector<8x1xf32>
    %47 = arith.subf %46, %45 : vector<8x1xf32>
    %48 = math.exp %47 : vector<8x1xf32>
    %cst_17 = arith.constant 1.000000e+00 : f32
    %49 = vector.broadcast %cst_17 : f32 to vector<8x1xf32>
    %50 = arith.addf %49, %48 : vector<8x1xf32>
    %51 = tpu.reciprocal %50 {approx = true} : vector<8x1xf32> -> vector<8x1xf32>
    %52 = tpu.iota {dimensions = array<i32: 1>} : vector<1x2xi32>
    %c0_i32 = arith.constant 0 : i32
    %53 = vector.broadcast %c0_i32 : i32 to vector<1x2xi32>
    %54 = arith.cmpi eq, %52, %53 : vector<1x2xi32>
    %cst_18 = arith.constant 1.000000e+00 : f32
    %55 = vector.broadcast %cst_18 : f32 to vector<8x1xf32>
    %56 = arith.subf %55, %51 : vector<8x1xf32>
    %57 = vector.shape_cast %54 : vector<1x2xi1> to vector<1x2xi1>
    %58 = vector.broadcast %57 : vector<1x2xi1> to vector<8x2xi1>
    %59 = vector.shape_cast %51 : vector<8x1xf32> to vector<8x1xf32>
    %60 = vector.broadcast %59 : vector<8x1xf32> to vector<8x2xf32>
    %61 = vector.shape_cast %56 : vector<8x1xf32> to vector<8x1xf32>
    %62 = vector.broadcast %61 : vector<8x1xf32> to vector<8x2xf32>
    %63 = arith.select %58, %60, %62 : vector<8x2xi1>, vector<8x2xf32>
    %c0_19 = arith.constant 0 : index
    %c0_20 = arith.constant 0 : index
    %64 = vector.load %arg8[%c0_19, %c0_20] : memref<8x2xf32, #tpu.memory_space<vmem>>, vector<8x2xf32>
    tpu.vector_store %arg8[%c0_19, %c0_20], %63 {strides = array<i32>} : memref<8x2xf32, #tpu.memory_space<vmem>>, vector<8x2xf32>,
    return
  }
  func.func @transform_0(%arg0: i32) -> (i32, i32) {
    %c0_i32 = arith.constant 0 : i32
    %c0_i32_0 = arith.constant 0 : i32
    return %arg0, %c0_i32 : i32, i32
  }
  func.func @transform_1(%arg0: i32) -> (i32, i32) {
    %c0_i32 = arith.constant 0 : i32
    %c0_i32_0 = arith.constant 0 : i32
    %c0_i32_1 = arith.constant 0 : i32
    return %c0_i32, %c0_i32_0 : i32, i32
  }
  func.func @transform_2(%arg0: i32) -> (i32, i32) {
    %c0_i32 = arith.constant 0 : i32
    %c0_i32_0 = arith.constant 0 : i32
    %c0_i32_1 = arith.constant 0 : i32
    return %c0_i32, %c0_i32_0 : i32, i32
  }
  func.func @transform_3(%arg0: i32) -> (i32, i32) {
    %c0_i32 = arith.constant 0 : i32
    %c0_i32_0 = arith.constant 0 : i32
    %c0_i32_1 = arith.constant 0 : i32
    return %c0_i32, %c0_i32_0 : i32, i32
  }
  func.func @transform_4(%arg0: i32) -> (i32, i32) {
    %c0_i32 = arith.constant 0 : i32
    %c0_i32_0 = arith.constant 0 : i32
    %c0_i32_1 = arith.constant 0 : i32
    return %c0_i32, %c0_i32_0 : i32, i32
  }
  func.func @transform_5(%arg0: i32) -> (i32, i32) {
    %c0_i32 = arith.constant 0 : i32
    %c0_i32_0 = arith.constant 0 : i32
    %c0_i32_1 = arith.constant 0 : i32
    return %c0_i32, %c0_i32_0 : i32, i32
  }
  func.func @transform_6(%arg0: i32) -> (i32, i32) {
    %c0_i32 = arith.constant 0 : i32
    %c0_i32_0 = arith.constant 0 : i32
    %c0_i32_1 = arith.constant 0 : i32
    return %c0_i32, %c0_i32_0 : i32, i32
  }
  func.func @transform_7(%arg0: i32) -> (i32, i32) {
    %c0_i32 = arith.constant 0 : i32
    %c0_i32_0 = arith.constant 0 : i32
    return %arg0, %c0_i32 : i32, i32
  }
}

</mosaic_0001>

<bundles_post_ra>
// kernel: tpu_custom_call.1
= control target key start
LH: loop header
LB: loop body
LE: loop exit
PB: predicated region body
PF: predicated region fallthrough
CT: control target
= control target key end

     0   :  { %s363_s0 = inlined_call_operand.vmem [shape: f32[8,4], index: 0, kind: input, shape index: {}]   ;;  %s364_s1 = inlined_call_operand.vmem [shape: f32[4,128], index: 1, kind: input, shape index: {}]   ;;  %s365_s2 = inlined_call_operand.vmem [shape: f32[1,128], index: 2, kind: input, shape index: {}]   ;;  %s366_s3 = inlined_call_operand.hbm [shape: bf16[128,128], index: 3, kind: input, shape index: {}]   ;;  %s367_s4 = inlined_call_operand.vmem [shape: f32[1,128], index: 4, kind: input, shape index: {}]   ;;  %s368_s5 = inlined_call_operand.vmem [shape: f32[1,128], index: 5, kind: input, shape index: {}]   ;;  %s369_s6 = inlined_call_operand.<no memory space> [shape: f32[1,1], index: 6, kind: input, shape index: {}]   ;;  %s370_s7 = inlined_call_operand.vmem [shape: f32[8,2], index: 7, kind: output, shape index: {}]  }
   0x1   :  { %v12_v0 = vstv %s369_s6 }
   0x2   :  { %13 = vst [vmem:[#allocation2] sm:$0x1] %v12_v0 }
   0x3   :  { %14 = vsyncpa [#allocation4], 0  ;;  %s25_s28 = sshll.u32 %s366_s3, 4  ;;  %s292_s29 = smov [#allocation3]   ;;  %s26_s28 = int_to_ptr.hbm [resolvable:$true] %s25_s28 }
   0x4   :  { %s27_s30 = sshll.u32 %s292_s29, 4  ;;  %s293_s8 = smov 64   ;;  %s28_s30 = int_to_ptr.vmem [resolvable:$true] %s27_s30 }
   0x5   :  { %s294_s9 = smov 4  }
   0x6   :  { %33 = dma.hbm_to_vmem [thread:$0]  %s26_s28, 1024, %s28_s30, [#allocation4], %s293_s8, %s293_s8, %s294_s9  }
   0x7   :  { %290 = dma.done.wait [#allocation4], 1024  }
   0x8   :  { %291 = vsyncadd [#allocation4], 4294966272  ;;  %v295_v1 = vmov 0   ;;  %v296_v2 = vmov 2   ;;  %v44_v3 = vld [vmem:[%s363_s0] sm:$0xff]  ;;  %v242_v5 = vld [vmem:[#allocation3 + $0x30] sm:$0xff]  ;;  %v180_v50 = vlaneseq }
   0x9   :  { %251 = vset.pattern.permute.xlu0 %v295_v1  ;;  %253 = vset.pattern.permute.xlu1 %v296_v2  ;;  %v243_v4 = vld [vmem:[#allocation3 + $0x38] sm:$0xff]  ;;  %v241_v6 = vld [vmem:[#allocation3 + $0x28] sm:$0xff]  ;;  %v297_v7 = vmov 1   ;;  %v298_v8 = vmov 3   ;;  %v240_v9 = vld [vmem:[#allocation3 + $0x20] sm:$0xff]  ;;  %vm197_vm1 = vcmask 15360  }
   0xa   :  { %255 = vset.pattern.permute.xlu2 %v295_v1  ;;  %49 = vperm.xlu0 %251, %v44_v3   ;;  %v239_v10 = vld [vmem:[#allocation3 + $0x18] sm:$0xff]  ;;  %v238_v11 = vld [vmem:[#allocation3 + $0x10] sm:$0xff]  ;;  %v237_v12 = vld [vmem:[#allocation3 + $0x8] sm:$0xff]  ;;  %v181_v51 = vand.u32 127, %v180_v50 }
   0xb   :  { %66 = vperm.xlu1 %253, %v44_v3   ;;  %149 = vmatpush.bf16.msra.mxu0 %v243_v4  ;;  %v236_v13 = vld [vmem:[#allocation3] sm:$0xff]  ;;  %v258_v18 = vld [vmem:[%s365_s2] ss:$0 sm:$0xff] }
   0xc   :  { %v45_v14 = vld [vmem:[%s364_s1] sm:$0xf]  ;;  %vm182_vm0 = vcmp.eq.s32.totalorder %v181_v51, 0 }
   0xd   :  { %v52_v17 = vperm.slane %v45_v14, 0  ;;  %v62_v20 = vperm.slane %v45_v14, 1  ;;  %v69_v21 = vperm.slane %v45_v14, 2  ;;  %v76_v22 = vperm.slane %v45_v14, 3  ;;  %v259_v34 = vld [vmem:[%s367_s4] ss:$0 sm:$0xff] }
   0xe   :  { %v260_v37 = vld [vmem:[%s368_s5] ss:$0 sm:$0xff] }
   0xf   :  { %150 = vmatpush.bf16.msra.mxu0 %v242_v5  ;;  %v261_v41 = vld [vmem:[#allocation2] ss:$0 sm:$0xff] }
  0x12   :  { %252 = vset.pattern.permute.xlu0 %v297_v7 }
  0x13   :  { %254 = vset.pattern.permute.xlu1 %v298_v8  ;;  %59 = vperm.xlu0 %252, %v44_v3  }
  0x14   :  { %73 = vperm.xlu1 %254, %v44_v3   ;;  %151 = vmatpush.bf16.msra.mxu0 %v241_v6 }
  0x18   :  { %152 = vmatpush.bf16.msra.mxu0 %v240_v9 }
  0x1b   :  { %257 = vset.pattern.permute.xlu0 %v295_v1 }
  0x1c   :  { %256 = vset.pattern.permute.xlu1 %v295_v1  ;;  %153 = vmatpush.bf16.msra.mxu0 %v239_v10 }
  0x20   :  { %154 = vmatpush.bf16.msra.mxu0 %v238_v11 }
  0x24   :  { %155 = vmatpush.bf16.msra.mxu0 %v237_v12 }
  0x28   :  { %156 = vmatpush.bf16.msra.mxu0 %v236_v13 }
  0x7c   :  { %v50_v15 = vpop.permute.xlu0 %49 }
  0x7d   :  { %v67_v16 = vpop.permute.xlu1 %66  ;;  %v53_v19 = vmul.f32 %v52_v17, %v50_v15 }
  0x7e   :  { %v70_v27 = vmul.f32 %v69_v21, %v67_v16 }
  0x7f   :  { %v57_v25 = vadd.f32 %v258_v18, %v53_v19 }
  0x85   :  { %v60_v23 = vpop.permute.xlu0 %59 }
  0x86   :  { %v74_v24 = vpop.permute.xlu1 %73  ;;  %v63_v26 = vmul.f32 %v62_v20, %v60_v23 }
  0x87   :  { %v77_v29 = vmul.f32 %v76_v22, %v74_v24 }
  0x88   :  { %v64_v28 = vadd.f32 %v63_v26, %v57_v25 }
  0x8a   :  { %v71_v30 = vadd.f32 %v70_v27, %v64_v28 }
  0x8c   :  { %v78_v31 = vadd.f32 %v77_v29, %v71_v30 }
  0x8e   :  { %v79_v32 = vmax.f32 %v78_v31, 0.0 }
  0x90   :  { %v80_v33 = vpack.c.bf16 %v79_v32, %v79_v32 }
  0x92   :  { %157 = vmatmul.bf16.vlgmr.msra.gmra.mxu0 %v80_v33 }
 0x10f   :  { %v158_v35 = vpop.f32.mrf.mxu0 }
 0x110   :  { %v159_v36 = vadd.f32 %v259_v34, %v158_v35 }
 0x112   :  { %v162_v38 = vmax.f32 %v159_v36, 0.0 }
 0x114   :  { %v167_v39 = vmul.f32 %v260_v37, %v162_v38 }
 0x116   :  { %168 = vadd.xlane.f32.xlu2 %v167_v39 }
 0x117   :  { %v160_v40 = vpop.f32.mrf.mxu0 }
 0x189   :  { %v169_v42 = vpop.xlane.xlu2 %168 }
 0x18a   :  { %v174_v43 = vadd.f32 %v261_v41, %v169_v42 }
 0x18c   :  { %v175_v44 = vsub.f32 0.0, %v174_v43 }
 0x18e   :  { %v176_v45 = vmul.f32 1.442695, %v175_v44 }
 0x190   :  { %262 = vpow2.f32 %v176_v45 }
 0x196   :  { %v263_v46 = vpop.eup %262 }
 0x197   :  { %v178_v47 = vadd.f32 1.0, %v263_v46 }
 0x199   :  { %264 = vrcp.f32 %v178_v47 }
 0x19f   :  { %v265_v48 = vpop.eup %264 }
 0x1a0   :  { %188 = vperm.xlu2 %255, %v265_v48   ;;  %v183_v49 = vsub.f32 1.0, %v265_v48 }
 0x1a2   :  { %193 = vperm.xlu1 %256, %v183_v49  }
 0x1fa   :  { %v189_v52 = vpop.permute.xlu2 %188 }
 0x214   :  { %v194_v53 = vpop.permute.xlu1 %193 }
 0x215   :  { %v196_v54 = vsel %vm182_vm0, %v189_v52, %v194_v53 }
 0x216   :  { %198 = vst.msk [vmem:[%s370_s7] sm:$0xff] %vm197_vm1, %v196_v54 }
 0x217   :  { %203 = vsyncpa [#allocation4], 1 }

</bundles_post_ra>
